<compile_context>
chip_gen: v6e
topology: v6e:2x2x1
jax: 0.10.0
libtpu: 0.0.40
codegen_flags: <defaults>
</compile_context>

<pallas_src>
import functools

import jax
import jax.numpy as jnp
from jax.experimental import pallas as pl
from jax.experimental.pallas import tpu as pltpu


def value_net_kernel(x_ref, w1_ref, b1_ref, w2_ref, b2_ref, w3_ref, b3_ref,
                     out_ref):
    # x tile: (D, TB) -- batch on the 128-wide lane axis.
    x = x_ref[...]
    w1 = w1_ref[...]                                   # (H, D)
    D = x.shape[0]

    # fc1 + ReLU as D unrolled broadcast FMAs on the VPU (K=D is tiny; the MXU
    # would only add a stationary load + result-drain to the latency chain).
    acc = w1[:, 0:1] * x[0:1, :]                       # (H, 1) * (1, TB) -> (H, TB)
    for d in range(1, D):
        acc = acc + w1[:, d:d + 1] * x[d:d + 1, :]
    h1 = jnp.maximum(acc + b1_ref[...], 0.0)           # (H, TB) + (H, 1)

    # fc2 + ReLU on the MXU: (H, H) @ (H, TB) -> (H, TB); 32x32 weight is the
    # small operand, batch streams through on the lane axis.
    h2 = jnp.dot(w2_ref[...], h1, preferred_element_type=jnp.float32)
    h2 = jnp.maximum(h2 + b2_ref[...], 0.0)

    # value_head (out_features = 1): VPU multiply + sublane reduction instead
    # of an N=1 MXU matmul.  (H, TB) * (H, 1) -> sum over H -> (1, TB)
    v = jnp.sum(h2 * w3_ref[...], axis=0, keepdims=True) + b3_ref[...]

    out_ref[...] = v.astype(out_ref.dtype)


@functools.partial(jax.jit, static_argnames=("tb",))
def value_network_forward(x, params, *, tb=8192):
    """x: [B, input_dim] float32 -> [B, 1] float32 (same semantics as the nn.Module)."""
    w1, b1, w2, b2, w3, b3 = params
    B, D = x.shape
    H = w1.shape[0]

    # Lane-dense layout: batch on the lane (last) axis.
    x_t = x.T                                          # (D, B)

    # --- batch tile selection -------------------------------------------------
    # VMEM budget per lane of tb (bytes): double-buffered x tile (2*D*4),
    # double-buffered out tile (2*1*4), h1+h2 intermediates (2*H*4).
    per_lane_bytes = 4 * (2 * D + 2 + 2 * H)
    tb_cap = max(128, (12 * 1024 * 1024 // per_lane_bytes) // 128 * 128)
    tb = min(tb, tb_cap)
    # Collapse to a single grid step whenever the padded batch fits one tile.
    tb = max(128, min((tb // 128) * 128, pl.cdiv(B, 128) * 128))
    b_pad = pl.cdiv(B, tb) * tb
    if b_pad != B:
        x_t = jnp.pad(x_t, ((0, 0), (0, b_pad - B)))
    num_tiles = b_pad // tb

    # Weights/biases: constant index_map -> VMEM-resident across all grid steps.
    resident = lambda shape: pl.BlockSpec(shape, lambda i: (0, 0))

    out = pl.pallas_call(
        value_net_kernel,
        out_shape=jax.ShapeDtypeStruct((1, b_pad), jnp.float32),
        grid=(num_tiles,),
        in_specs=[
            pl.BlockSpec((D, tb), lambda i: (0, i)),   # x tile (pipelined)
            resident((H, D)),                          # w1
            resident((H, 1)),                          # b1
            resident((H, H)),                          # w2
            resident((H, 1)),                          # b2
            resident((H, 1)),                          # w3 (column layout)
            resident((1, 1)),                          # b3
        ],
        out_specs=pl.BlockSpec((1, tb), lambda i: (0, i)),
        compiler_params=pltpu.CompilerParams(
            dimension_semantics=("parallel",)),
    )(x_t, w1, b1, w2, b2, w3.reshape(-1, 1), b3)

    # Back to the module's [B, 1] contract (padded columns are sliced off
    # BEFORE any downstream reduction).
    return out[:, :B].T


def init_params(key, input_dim, hidden_dim):
    """nn.Linear-style init U(-1/sqrt(fan_in), 1/sqrt(fan_in)); weights stored [out, in]."""
    ks = jax.random.split(key, 6)

    def linear(kw, kb, fan_in, fan_out):
        bound = 1.0 / jnp.sqrt(jnp.float32(fan_in))
        w = jax.random.uniform(kw, (fan_out, fan_in), jnp.float32, -bound, bound)
        b = jax.random.uniform(kb, (fan_out, 1), jnp.float32, -bound, bound)
        return w, b

    w1, b1 = linear(ks[0], ks[1], input_dim, hidden_dim)
    w2, b2 = linear(ks[2], ks[3], hidden_dim, hidden_dim)
    w3, b3 = linear(ks[4], ks[5], hidden_dim, 1)        # w3: (1, H), b3: (1, 1)
    return (w1, b1, w2, b2, w3, b3)


if __name__ == "__main__":
    key = jax.random.PRNGKey(0)
    k_x, k_p = jax.random.split(key)

    batch = 256          # > 128 so the lane-dense tile is exercised; single grid step
    input_dim = 4        # small observation vector
    hidden_dim = 32

    x = jax.random.normal(k_x, (batch, input_dim), jnp.float32)
    params = init_params(k_p, input_dim, hidden_dim)

    out = value_network_forward(x, params)
    out = jax.block_until_ready(out)

    # shape contract of the module: [B, 1]
    assert out.shape == (batch, 1), out.shape

    # plain-JAX reference (weights are [out, in], biases [out, 1])
    w1, b1, w2, b2, w3, b3 = params
    h1 = jnp.maximum(x @ w1.T + b1[:, 0], 0.0)
    h2 = jnp.maximum(h1 @ w2.T + b2[:, 0], 0.0)
    ref = h2 @ w3.T + b3[:, 0]                          # (B, 32) @ (32, 1) -> (B, 1)
    assert jnp.allclose(out, ref, atol=1e-4, rtol=1e-4), float(
        jnp.max(jnp.abs(out - ref)))

    print("KERNEL_OK")
</pallas_src>

<mosaic_0001>
module attributes {stable_mosaic.version = 11 : i64} {
  func.func @value_net_kernel(%arg0: i32, %arg1: memref<4x256xf32, #tpu.memory_space<vmem>>, %arg2: memref<32x4xf32, #tpu.memory_space<vmem>>, %arg3: memref<32x1xf32, #tpu.memory_space<vmem>>, %arg4: memref<32x32xf32, #tpu.memory_space<vmem>>, %arg5: memref<32x1xf32, #tpu.memory_space<vmem>>, %arg6: memref<32x1xf32, #tpu.memory_space<vmem>>, %arg7: memref<1x1xf32, #tpu.memory_space<vmem>>, %arg8: memref<1x256xf32, #tpu.memory_space<vmem>>) attributes {dimension_semantics = [#tpu.dimension_semantics<parallel>], iteration_bounds = array<i64: 1>, scalar_prefetch = 0 : i64, scratch_operands = 0 : i64, tpu.core_type = #tpu.core_type<tc>, window_params = [{transform_indices = @transform_0, window_bounds = array<i64: 4, 256>}, {pipeline_mode = #tpu.pipeline_mode<synchronous>, transform_indices = @transform_1, window_bounds = array<i64: 32, 4>}, {pipeline_mode = #tpu.pipeline_mode<synchronous>, transform_indices = @transform_2, window_bounds = array<i64: 32, 1>}, {pipeline_mode = #tpu.pipeline_mode<synchronous>, transform_indices = @transform_3, window_bounds = array<i64: 32, 32>}, {pipeline_mode = #tpu.pipeline_mode<synchronous>, transform_indices = @transform_4, window_bounds = array<i64: 32, 1>}, {pipeline_mode = #tpu.pipeline_mode<synchronous>, transform_indices = @transform_5, window_bounds = array<i64: 32, 1>}, {pipeline_mode = #tpu.pipeline_mode<synchronous>, transform_indices = @transform_6, window_bounds = array<i64: 1, 1>}, {transform_indices = @transform_7, window_bounds = array<i64: 1, 256>}]} {
    %c0 = arith.constant 0 : index
    %c0_0 = arith.constant 0 : index
    %0 = vector.load %arg1[%c0, %c0_0] : memref<4x256xf32, #tpu.memory_space<vmem>>, vector<4x256xf32>
    %c0_1 = arith.constant 0 : index
    %c0_2 = arith.constant 0 : index
    %1 = vector.load %arg2[%c0_1, %c0_2] : memref<32x4xf32, #tpu.memory_space<vmem>>, vector<32x4xf32>
    %2 = vector.extract_strided_slice %1 {offsets = [0, 0], sizes = [32, 1], strides = [1, 1]} : vector<32x4xf32> to vector<32x1xf32>
    %3 = vector.extract_strided_slice %0 {offsets = [0, 0], sizes = [1, 256], strides = [1, 1]} : vector<4x256xf32> to vector<1x256xf32>
    %4 = vector.broadcast %2 : vector<32x1xf32> to vector<32x256xf32>
    %5 = vector.broadcast %3 : vector<1x256xf32> to vector<32x256xf32>
    %6 = arith.mulf %4, %5 : vector<32x256xf32>
    %7 = vector.extract_strided_slice %1 {offsets = [0, 1], sizes = [32, 1], strides = [1, 1]} : vector<32x4xf32> to vector<32x1xf32>
    %8 = vector.extract_strided_slice %0 {offsets = [1, 0], sizes = [1, 256], strides = [1, 1]} : vector<4x256xf32> to vector<1x256xf32>
    %9 = vector.broadcast %7 : vector<32x1xf32> to vector<32x256xf32>
    %10 = vector.broadcast %8 : vector<1x256xf32> to vector<32x256xf32>
    %11 = arith.mulf %9, %10 : vector<32x256xf32>
    %12 = arith.addf %6, %11 : vector<32x256xf32>
    %13 = vector.extract_strided_slice %1 {offsets = [0, 2], sizes = [32, 1], strides = [1, 1]} : vector<32x4xf32> to vector<32x1xf32>
    %14 = vector.extract_strided_slice %0 {offsets = [2, 0], sizes = [1, 256], strides = [1, 1]} : vector<4x256xf32> to vector<1x256xf32>
    %15 = vector.broadcast %13 : vector<32x1xf32> to vector<32x256xf32>
    %16 = vector.broadcast %14 : vector<1x256xf32> to vector<32x256xf32>
    %17 = arith.mulf %15, %16 : vector<32x256xf32>
    %18 = arith.addf %12, %17 : vector<32x256xf32>
    %19 = vector.extract_strided_slice %1 {offsets = [0, 3], sizes = [32, 1], strides = [1, 1]} : vector<32x4xf32> to vector<32x1xf32>
    %20 = vector.extract_strided_slice %0 {offsets = [3, 0], sizes = [1, 256], strides = [1, 1]} : vector<4x256xf32> to vector<1x256xf32>
    %21 = vector.broadcast %19 : vector<32x1xf32> to vector<32x256xf32>
    %22 = vector.broadcast %20 : vector<1x256xf32> to vector<32x256xf32>
    %23 = arith.mulf %21, %22 : vector<32x256xf32>
    %24 = arith.addf %18, %23 : vector<32x256xf32>
    %c0_3 = arith.constant 0 : index
    %c0_4 = arith.constant 0 : index
    %25 = vector.load %arg3[%c0_3, %c0_4] : memref<32x1xf32, #tpu.memory_space<vmem>>, vector<32x1xf32>
    %26 = vector.broadcast %25 : vector<32x1xf32> to vector<32x256xf32>
    %27 = arith.addf %24, %26 : vector<32x256xf32>
    %cst = arith.constant 0.000000e+00 : f32
    %28 = vector.broadcast %cst : f32 to vector<32x256xf32>
    %29 = arith.maximumf %27, %28 : vector<32x256xf32>
    %c0_5 = arith.constant 0 : index
    %c0_6 = arith.constant 0 : index
    %30 = vector.load %arg4[%c0_5, %c0_6] : memref<32x32xf32, #tpu.memory_space<vmem>>, vector<32x32xf32>
    %cst_7 = arith.constant dense<0.000000e+00> : vector<32x256xf32>
    %31 = tpu.matmul %30, %29, %cst_7 {dimension_numbers = #tpu.dot_dimension_numbers<[1], [0], [0], [1], [0, 0, 1, 1], [], []>} : vector<32x32xf32>, vector<32x256xf32>, vector<32x256xf32> -> vector<32x256xf32>
    %c0_8 = arith.constant 0 : index
    %c0_9 = arith.constant 0 : index
    %32 = vector.load %arg5[%c0_8, %c0_9] : memref<32x1xf32, #tpu.memory_space<vmem>>, vector<32x1xf32>
    %33 = vector.broadcast %32 : vector<32x1xf32> to vector<32x256xf32>
    %34 = arith.addf %31, %33 : vector<32x256xf32>
    %cst_10 = arith.constant 0.000000e+00 : f32
    %35 = vector.broadcast %cst_10 : f32 to vector<32x256xf32>
    %36 = arith.maximumf %34, %35 : vector<32x256xf32>
    %c0_11 = arith.constant 0 : index
    %c0_12 = arith.constant 0 : index
    %37 = vector.load %arg6[%c0_11, %c0_12] : memref<32x1xf32, #tpu.memory_space<vmem>>, vector<32x1xf32>
    %38 = vector.broadcast %37 : vector<32x1xf32> to vector<32x256xf32>
    %39 = arith.mulf %36, %38 : vector<32x256xf32>
    %cst_13 = arith.constant dense<0.000000e+00> : vector<256xf32>
    %40 = vector.multi_reduction <add>, %39, %cst_13 [0] : vector<32x256xf32> to vector<256xf32>
    %41 = vector.shape_cast %40 : vector<256xf32> to vector<1x256xf32>
    %c0_14 = arith.constant 0 : index
    %c0_15 = arith.constant 0 : index
    %42 = vector.load %arg7[%c0_14, %c0_15] : memref<1x1xf32, #tpu.memory_space<vmem>>, vector<1x1xf32>
    %43 = vector.broadcast %42 : vector<1x1xf32> to vector<1x256xf32>
    %44 = arith.addf %41, %43 : vector<1x256xf32>
    %c0_16 = arith.constant 0 : index
    %c0_17 = arith.constant 0 : index
    %45 = vector.load %arg8[%c0_16, %c0_17] : memref<1x256xf32, #tpu.memory_space<vmem>>, vector<1x256xf32>
    tpu.vector_store %arg8[%c0_16, %c0_17], %44 {strides = array<i32>} : memref<1x256xf32, #tpu.memory_space<vmem>>, vector<1x256xf32>,
    return
  }
  func.func @transform_0(%arg0: i32) -> (i32, i32) {
    %c0_i32 = arith.constant 0 : i32
    %c0_i32_0 = arith.constant 0 : i32
    return %c0_i32, %arg0 : i32, i32
  }
  func.func @transform_1(%arg0: i32) -> (i32, i32) {
    %c0_i32 = arith.constant 0 : i32
    %c0_i32_0 = arith.constant 0 : i32
    %c0_i32_1 = arith.constant 0 : i32
    return %c0_i32, %c0_i32_0 : i32, i32
  }
  func.func @transform_2(%arg0: i32) -> (i32, i32) {
    %c0_i32 = arith.constant 0 : i32
    %c0_i32_0 = arith.constant 0 : i32
    %c0_i32_1 = arith.constant 0 : i32
    return %c0_i32, %c0_i32_0 : i32, i32
  }
  func.func @transform_3(%arg0: i32) -> (i32, i32) {
    %c0_i32 = arith.constant 0 : i32
    %c0_i32_0 = arith.constant 0 : i32
    %c0_i32_1 = arith.constant 0 : i32
    return %c0_i32, %c0_i32_0 : i32, i32
  }
  func.func @transform_4(%arg0: i32) -> (i32, i32) {
    %c0_i32 = arith.constant 0 : i32
    %c0_i32_0 = arith.constant 0 : i32
    %c0_i32_1 = arith.constant 0 : i32
    return %c0_i32, %c0_i32_0 : i32, i32
  }
  func.func @transform_5(%arg0: i32) -> (i32, i32) {
    %c0_i32 = arith.constant 0 : i32
    %c0_i32_0 = arith.constant 0 : i32
    %c0_i32_1 = arith.constant 0 : i32
    return %c0_i32, %c0_i32_0 : i32, i32
  }
  func.func @transform_6(%arg0: i32) -> (i32, i32) {
    %c0_i32 = arith.constant 0 : i32
    %c0_i32_0 = arith.constant 0 : i32
    %c0_i32_1 = arith.constant 0 : i32
    return %c0_i32, %c0_i32_0 : i32, i32
  }
  func.func @transform_7(%arg0: i32) -> (i32, i32) {
    %c0_i32 = arith.constant 0 : i32
    %c0_i32_0 = arith.constant 0 : i32
    return %c0_i32, %arg0 : i32, i32
  }
}

</mosaic_0001>

<bundles_post_ra>
// kernel: value_network_forward.1
= control target key start
LH: loop header
LB: loop body
LE: loop exit
PB: predicated region body
PF: predicated region fallthrough
CT: control target
= control target key end

     0   :  { %s743_s0 = inlined_call_operand.vmem [shape: f32[4,256], index: 0, kind: input, shape index: {}]   ;;  %s744_s1 = inlined_call_operand.vmem [shape: f32[32,4], index: 1, kind: input, shape index: {}]   ;;  %s745_s2 = inlined_call_operand.vmem [shape: f32[32,1], index: 2, kind: input, shape index: {}]   ;;  %s746_s3 = inlined_call_operand.vmem [shape: f32[32,32], index: 3, kind: input, shape index: {}]   ;;  %s747_s4 = inlined_call_operand.vmem [shape: f32[32,1], index: 4, kind: input, shape index: {}]   ;;  %s748_s5 = inlined_call_operand.vmem [shape: f32[32,1], index: 5, kind: input, shape index: {}]   ;;  %s749_s6 = inlined_call_operand.<no memory space> [shape: f32[1,1], index: 6, kind: input, shape index: {}]   ;;  %s750_s7 = inlined_call_operand.hbm [shape: f32[1,256], index: 7, kind: output, shape index: {}]  }
   0x1   :  { %v12_v0 = vstv %s749_s6 }
   0x2   :  { %13 = vst [vmem:[#allocation2] sm:$0x1] %v12_v0 }
   0x3   :  { %v33_v1 = vld [vmem:[%s744_s1 + $0x18] sm:$0xff]  ;;  %v32_v2 = vld [vmem:[%s744_s1 + $0x10] sm:$0xff]  ;;  %v566_v3 = vmov 1   ;;  %v567_v4 = vmov 0  }
   0x4   :  { %527 = vset.pattern.permute.xlu0 %v566_v3  ;;  %529 = vset.pattern.permute.xlu1 %v567_v4 }
   0x5   :  { %94 = vperm.xlu0 %527, %v33_v1   ;;  %46 = vperm.xlu1 %529, %v32_v2  }
   0x9   :  { %528 = vset.pattern.permute.xlu0 %v567_v4  ;;  %530 = vset.pattern.permute.xlu1 %v566_v3 }
   0xa   :  { %14 = vsyncpa [#allocation4], 0  ;;  %51 = vperm.xlu0 %528, %v33_v1   ;;  %90 = vperm.xlu1 %530, %v32_v2   ;;  %v31_v5 = vld [vmem:[%s744_s1 + $0x8] sm:$0xff]  ;;  %v568_v6 = vmov 2   ;;  %v569_v7 = vmov 3   ;;  %v30_v8 = vld [vmem:[%s744_s1] sm:$0xff]  ;;  %v55_v27 = vlaneseq }
   0xb   :  { %v233_v9 = vld [vmem:[%s745_s2 + $0x10] sm:$0xff]  ;;  %v275_v10 = vld [vmem:[%s747_s4] sm:$0xff]  ;;  %v234_v14 = vld [vmem:[%s745_s2 + $0x18] sm:$0xff]  ;;  %v570_v19 = vmov 0.0   ;;  %vm299_vm0 = vcmask 261120  }
   0xc   :  { %v277_v11 = vld [vmem:[%s747_s4 + $0x10] sm:$0xff]  ;;  %v409_v12 = vld [vmem:[%s748_s5] sm:$0xff]  ;;  %v232_v16 = vld [vmem:[%s745_s2 + $0x8] sm:$0xff]  ;;  %376 = vmatprep.mubr.f32.mxu0 %v570_v19  ;;  %388 = vmatprep.mubr.f32.mxu1 %v570_v19  ;;  %v669_v30 = vshrl.u32 %v55_v27, 7  ;;  %vm491_vm1 = vcmp.lt.s32.totalorder %v55_v27, 256 }
   0xd   :  { %v411_v13 = vld [vmem:[%s748_s5 + $0x10] sm:$0xff]  ;;  %v459_v15 = vld [vmem:[#allocation2] sm:$0x1]  ;;  %v276_v18 = vld [vmem:[%s747_s4 + $0x8] sm:$0xff] }
   0xe   :  { %531 = vset.pattern.permute.xlu1 %v568_v6  ;;  %41 = vperm.xlu0 %528, %v31_v5   ;;  %v231_v17 = vld [vmem:[%s745_s2] sm:$0xff]  ;;  %v278_v20 = vld [vmem:[%s747_s4 + $0x18] sm:$0xff]  ;;  %v410_v21 = vld [vmem:[%s748_s5 + $0x8] sm:$0xff]  ;;  %v103_v32 = vsub.s32 5, %v669_v30  ;;  %v673_v33 = vsub.s32 0, %v669_v30  ;;  %v61_v34 = vsub.s32 4, %v669_v30 }
   0xf   :  { %144 = vperm.xlu1 %531, %v33_v1   ;;  %v412_v22 = vld [vmem:[%s748_s5 + $0x18] sm:$0xff]  ;;  %v99_v35 = vsub.s32 1, %v669_v30  ;;  %v29_v37 = vld [vmem:[%s743_s0] sm:$0xff]  ;;  %v149_v40 = vsub.s32 2, %v669_v30  ;;  %v153_v41 = vsub.s32 6, %v669_v30  ;;  %v199_v45 = vsub.s32 3, %v669_v30 }
  0x10   :  { %v104_v38 = vrot.slane %v29_v37, %v103_v32  ;;  %v58_v42 = vrot.slane %v29_v37, %v673_v33  ;;  %v62_v43 = vrot.slane %v29_v37, %v61_v34  ;;  %v203_v46 = vsub.s32 7, %v669_v30 }
  0x11   :  { %v100_v44 = vrot.slane %v29_v37, %v99_v35  ;;  %v150_v49 = vrot.slane %v29_v37, %v149_v40  ;;  %v154_v50 = vrot.slane %v29_v37, %v153_v41  ;;  %v200_v55 = vrot.slane %v29_v37, %v199_v45 }
  0x12   :  { %536 = vset.pattern.permute.xlu0 %v568_v6  ;;  %v687_v47 = vrot.slane %v104_v38, %v99_v35  ;;  %v690_v52 = vrot.slane %v58_v42, %v673_v33  ;;  %v693_v53 = vrot.slane %v62_v43, %v673_v33  ;;  %v204_v56 = vrot.slane %v29_v37, %v203_v46 }
  0x13   :  { %532 = vset.pattern.permute.xlu1 %v566_v3  ;;  %136 = vperm.xlu0 %536, %v31_v5   ;;  %v110_v54 = vrot.slane %v100_v44, %v99_v35  ;;  %v160_v62 = vrot.slane %v150_v49, %v149_v40  ;;  %v164_v63 = vrot.slane %v154_v50, %v149_v40 }
  0x14   :  { %86 = vperm.xlu1 %532, %v31_v5  }
  0x17   :  { %537 = vset.pattern.permute.xlu0 %v569_v7 }
  0x18   :  { %533 = vset.pattern.permute.xlu1 %v568_v6  ;;  %194 = vperm.xlu0 %537, %v33_v1  }
  0x19   :  { %140 = vperm.xlu1 %533, %v32_v2  }
  0x1c   :  { %186 = vperm.xlu0 %537, %v31_v5   ;;  %v702_v5 = vrot.slane %v204_v56, %v199_v45 }
  0x1d   :  { %534 = vset.pattern.permute.xlu1 %v567_v4 }
  0x1e   :  { %36 = vperm.xlu1 %534, %v30_v8  }
  0x20   :  { %542 = vset.pattern.permute.xlu0 %v567_v4 }
  0x21   :  { %247 = vperm.xlu0 %542, %v233_v9  }
  0x22   :  { %535 = vset.pattern.permute.xlu1 %v566_v3 }
  0x23   :  { %82 = vperm.xlu1 %535, %v30_v8  }
  0x25   :  { %281 = vperm.xlu0 %542, %v275_v10  }
  0x27   :  { %538 = vset.pattern.permute.xlu1 %v569_v7 }
  0x28   :  { %190 = vperm.xlu1 %538, %v32_v2  }
  0x29   :  { %291 = vperm.xlu0 %542, %v277_v11  }
  0x2c   :  { %539 = vset.pattern.permute.xlu1 %v568_v6 }
  0x2d   :  { %132 = vperm.xlu1 %539, %v30_v8   ;;  %415 = vperm.xlu0 %542, %v409_v12  }
  0x31   :  { %540 = vset.pattern.permute.xlu1 %v567_v4  ;;  %425 = vperm.xlu0 %542, %v411_v13  }
  0x32   :  { %252 = vperm.xlu1 %540, %v234_v14  }
  0x35   :  { %462 = vperm.xlu0 %542, %v459_v15  }
  0x36   :  { %541 = vset.pattern.permute.xlu1 %v569_v7 }
  0x37   :  { %182 = vperm.xlu1 %541, %v30_v8  }
  0x3b   :  { %543 = vset.pattern.permute.xlu1 %v567_v4  ;;  %v700_v4 = vrot.slane %v200_v55, %v199_v45 }
  0x3c   :  { %242 = vperm.xlu1 %543, %v232_v16  }
  0x40   :  { %237 = vperm.xlu1 %543, %v231_v17  }
  0x44   :  { %286 = vperm.xlu1 %543, %v276_v18  }
  0x48   :  { %296 = vperm.xlu1 %543, %v278_v20  }
  0x4c   :  { %420 = vperm.xlu1 %543, %v410_v21  }
  0x50   :  { %430 = vperm.xlu1 %543, %v412_v22  }
  0x80   :  { %v47_v23 = vpop.permute.xlu1 %46  ;;  %v95_v26 = vpop.permute.xlu0 %94 }
  0x81   :  { %v121_v57 = vmul.f32 %v110_v54, %v95_v26  ;;  %v122_v60 = vmul.f32 %v687_v47, %v95_v26  ;;  %v78_v0 = vmul.f32 %v693_v53, %v47_v23  ;;  %v77_v7 = vmul.f32 %v690_v52, %v47_v23 }
  0x85   :  { %v91_v24 = vpop.permute.xlu1 %90  ;;  %v52_v29 = vpop.permute.xlu0 %51 }
  0x86   :  { %v120_v58 = vmul.f32 %v687_v47, %v91_v24  ;;  %v79_v59 = vmul.f32 %v690_v52, %v52_v29  ;;  %v80_v61 = vmul.f32 %v693_v53, %v52_v29  ;;  %v119_v1 = vmul.f32 %v110_v54, %v91_v24 }
  0x88   :  { %v128_v8 = vadd.f32 %v120_v58, %v78_v0  ;;  %v129_v9 = vadd.f32 %v121_v57, %v79_v59  ;;  %v130_v11 = vadd.f32 %v122_v60, %v80_v61  ;;  %v127_v15 = vadd.f32 %v119_v1, %v77_v7 }
  0x89   :  { %v42_v36 = vpop.permute.xlu0 %41 }
  0x8a   :  { %v145_v25 = vpop.permute.xlu1 %144  ;;  %v75_v29 = vmul.f32 %v690_v52, %v42_v36 }
  0x8b   :  { %v171_v12 = vmul.f32 %v160_v62, %v145_v25  ;;  %v172_v13 = vmul.f32 %v164_v63, %v145_v25  ;;  %v76_v25 = vmul.f32 %v693_v53, %v42_v36 }
  0x8d   :  { %v179_v23 = vadd.f32 %v171_v12, %v129_v9  ;;  %v180_v26 = vadd.f32 %v172_v13, %v130_v11 }
  0x8e   :  { %v137_v48 = vpop.permute.xlu0 %136 }
  0x8f   :  { %v666_v28 = vpop.permute.xlu1 %86  ;;  %v167_v42 = vmul.f32 %v160_v62, %v137_v48  ;;  %v168_v50 = vmul.f32 %v164_v63, %v137_v48 }
  0x90   :  { %v117_v32 = vmul.f32 %v110_v54, %v666_v28  ;;  %v118_v34 = vmul.f32 %v687_v47, %v666_v28 }
  0x92   :  { %v125_v46 = vadd.f32 %v117_v32, %v75_v29  ;;  %v126_v49 = vadd.f32 %v118_v34, %v76_v25 }
  0x93   :  { %v195_v2 = vpop.permute.xlu0 %194 }
  0x94   :  { %v141_v31 = vpop.permute.xlu1 %140  ;;  %v221_v17 = vmul.f32 %v700_v4, %v195_v2  ;;  %v222_v18 = vmul.f32 %v702_v5, %v195_v2  ;;  %v175_v0 = vadd.f32 %v167_v42, %v125_v46  ;;  %v176_v1 = vadd.f32 %v168_v50, %v126_v49 }
  0x95   :  { %v170_v6 = vmul.f32 %v164_v63, %v141_v31  ;;  %v169_v10 = vmul.f32 %v160_v62, %v141_v31 }
  0x96   :  { %v229_v37 = vadd.f32 %v221_v17, %v179_v23  ;;  %v230_v38 = vadd.f32 %v222_v18, %v180_v26 }
  0x97   :  { %v178_v20 = vadd.f32 %v170_v6, %v128_v8  ;;  %v177_v22 = vadd.f32 %v169_v10, %v127_v15  ;;  %v187_v24 = vpop.permute.xlu0 %186 }
  0x98   :  { %v217_v57 = vmul.f32 %v700_v4, %v187_v24  ;;  %v218_v58 = vmul.f32 %v702_v5, %v187_v24 }
  0x99   :  { %v680_v39 = vpop.permute.xlu1 %36 }
  0x9a   :  { %v73_v2 = vmul.f32 %v690_v52, %v680_v39 }
  0x9c   :  { %v248_v40 = vpop.permute.xlu0 %247 }
  0x9e   :  { %v83_v51 = vpop.permute.xlu1 %82 }
  0x9f   :  { %v115_v28 = vmul.f32 %v110_v54, %v83_v51  ;;  %v116_v59 = vmul.f32 %v687_v47, %v83_v51  ;;  %v225_v47 = vadd.f32 %v217_v57, %v175_v0  ;;  %v226_v51 = vadd.f32 %v218_v58, %v176_v1 }
  0xa0   :  { %v282_v24 = vpop.permute.xlu0 %281 }
  0xa1   :  { %v123_v54 = vadd.f32 %v115_v28, %v73_v2 }
  0xa3   :  { %v191_v3 = vpop.permute.xlu1 %190 }
  0xa4   :  { %v220_v14 = vmul.f32 %v702_v5, %v191_v3  ;;  %v219_v16 = vmul.f32 %v700_v4, %v191_v3  ;;  %v74_v3 = vmul.f32 %v693_v53, %v680_v39  ;;  %v292_v26 = vpop.permute.xlu0 %291 }
  0xa6   :  { %v228_v31 = vadd.f32 %v220_v14, %v178_v20  ;;  %v227_v35 = vadd.f32 %v219_v16, %v177_v22  ;;  %v124_v8 = vadd.f32 %v116_v59, %v74_v3  ;;  %v273_v20 = vld [vmem:[%s746_s3 + $0x10] sm:$0xff]  ;;  %v274_v22 = vld [vmem:[%s746_s3 + $0x18] sm:$0xff] }
  0xa8   :  { %v133_v21 = vpop.permute.xlu1 %132  ;;  %v260_v45 = vadd.f32 %v248_v40, %v228_v31  ;;  %v259_v55 = vadd.f32 %v248_v40, %v227_v35 }
  0xa9   :  { %v165_v6 = vmul.f32 %v160_v62, %v133_v21  ;;  %v166_v7 = vmul.f32 %v164_v63, %v133_v21  ;;  %v272_v21 = vld [vmem:[%s746_s3 + $0x8] sm:$0xff] }
  0xaa   :  { %v268_v61 = vmax.f32 %v260_v45, 0.0  ;;  %v267_v48 = vmax.f32 %v259_v55, 0.0 }
  0xab   :  { %v173_v11 = vadd.f32 %v165_v6, %v123_v54  ;;  %v174_v12 = vadd.f32 %v166_v7, %v124_v8 }
  0xad   :  { %v253_v41 = vpop.permute.xlu1 %252 }
  0xae   :  { %v261_v43 = vadd.f32 %v253_v41, %v229_v37  ;;  %v262_v44 = vadd.f32 %v253_v41, %v230_v38  ;;  %v416_v41 = vpop.permute.xlu0 %415 }
  0xb0   :  { %v270_v56 = vmax.f32 %v262_v44, 0.0  ;;  %v269_v36 = vmax.f32 %v261_v43, 0.0 }
  0xb2   :  { %v183_v60 = vpop.permute.xlu1 %182  ;;  %336 = vmatprep.subr.mxu0 %v270_v56  ;;  %512 = vmatprep.subr.mxu1 %v270_v56  ;;  %v426_v1 = vpop.permute.xlu0 %425 }
  0xb3   :  { %337 = vmatpush1.msra.mxu0 %v269_v36  ;;  %516 = vmatpush1.msra.mxu1 %v269_v36  ;;  %v215_v9 = vmul.f32 %v700_v4, %v183_v60  ;;  %v216_v52 = vmul.f32 %v702_v5, %v183_v60  ;;  %v271_v5 = vld [vmem:[%s746_s3] sm:$0xff]  ;;  %s572_s3 = smov [#allocation3]  }
  0xb4   :  { %338 = vmatprep.subr.mxu0 %v268_v61  ;;  %513 = vmatprep.subr.mxu1 %v268_v61  ;;  %s500_s15 = sshll.u32 %s572_s3, 4  ;;  %s501_s15 = int_to_ptr.vmem [resolvable:$true] %s500_s15 }
  0xb5   :  { %339 = vmatpush1.msra.mxu0 %v267_v48  ;;  %517 = vmatpush1.msra.mxu1 %v267_v48  ;;  %v223_v62 = vadd.f32 %v215_v9, %v173_v11  ;;  %v224_v63 = vadd.f32 %v216_v52, %v174_v12  ;;  %s544_s1 = scalar_lea.vmem %s501_s15, 32  ;;  %p549_p1 = scmp.lt.s32.totalorder %s501_s15, %s501_s15 }
  0xb6   :  { %p545_p0 = scmp.ne.s32.totalorder %s501_s15, %s544_s1  ;;  %p550_p2 = scmp.lt.s32.totalorder %s544_s1, %s544_s1 }
  0xb7   :  { %v243_v10 = vpop.permute.xlu1 %242 }
  0xb8   :  { %v257_v13 = vadd.f32 %v243_v10, %v225_v47  ;;  %v258_v14 = vadd.f32 %v243_v10, %v226_v51  ;;  %p551_p3 = por %p550_p2, %p549_p1 }
  0xba   :  { %v265_v39 = vmax.f32 %v257_v13, 0.0  ;;  %v266_v53 = vmax.f32 %v258_v14, 0.0  ;;  %p552_p4 = pnand %p551_p3, %p545_p0 }
  0xbb   :  { %v238_v15 = vpop.permute.xlu1 %237 }
  0xbc   :  { %v255_v16 = vadd.f32 %v238_v15, %v223_v62  ;;  %v256_v17 = vadd.f32 %v238_v15, %v224_v63  ;;  %340 = vmatprep.subr.mxu0 %v266_v53  ;;  %514 = vmatprep.subr.mxu1 %v266_v53  ;;  %v571_v15 = vmov 1966171168  }
  0xbd   :  { %341 = vmatpush1.msra.mxu0 %v265_v39  ;;  %518 = vmatpush1.msra.mxu1 %v265_v39 }
  0xbe   :  { %v263_v18 = vmax.f32 %v255_v16, 0.0  ;;  %v264_v4 = vmax.f32 %v256_v17, 0.0  ;;  %v475_v16 = vunpack.c.l.s4 %v571_v15 }
  0xbf   :  { %v287_v23 = vpop.permute.xlu1 %286 }
  0xc0   :  { %342 = vmatprep.subr.mxu0 %v264_v4  ;;  %515 = vmatprep.subr.mxu1 %v264_v4  ;;  %v463_v4 = vpop.permute.xlu0 %462 }
  0xc1   :  { %343 = vmatpush1.msra.mxu0 %v263_v18  ;;  %519 = vmatpush1.msra.mxu1 %v263_v18 }
  0xc2   :  { %508 = vmatmul.mubr.msk.f32.vlgmr.msra.gmra.mxu0 %vm299_vm0, %v271_v5  ;;  %510 = vmatmul.mubr.msk.f32.vlgmr.msra.gmra.mxu1 %vm299_vm0, %v273_v20 }
  0xc3   :  { %382 = vmatprep.mubr.f32.mxu0 %v570_v19  ;;  %394 = vmatprep.mubr.f32.mxu1 %v570_v19  ;;  %v297_v25 = vpop.permute.xlu1 %296 }
  0xc6   :  { %509 = vmatmul.mubr.msk.f32.gmra.mxu0 %vm299_vm0, %v272_v21  ;;  %511 = vmatmul.mubr.msk.f32.gmra.mxu1 %vm299_vm0, %v274_v22  ;;  %v476_v21 = vunpack.c.0.s8 %v475_v16 }
  0xc7   :  { %v421_v50 = vpop.permute.xlu1 %420 }
  0xcb   :  { %v431_v47 = vpop.permute.xlu1 %430 }
 0x182   :  { %v378_v29 = vpop.f32.mrf.mxu0  ;;  %v390_v31 = vpop.f32.mrf.mxu1 }
 0x183   :  { %v379_v32 = vadd.f32 %v378_v29, %v282_v24  ;;  %v391_v37 = vadd.f32 %v390_v31, %v292_v26  ;;  %v479_v31 = vsub.s32 %v476_v21, %v669_v30 }
 0x184   :  { %v380_v34 = vpop.f32.mrf.mxu0  ;;  %v392_v35 = vpop.f32.mrf.mxu1 }
 0x185   :  { %v381_v19 = vadd.f32 %v380_v34, %v282_v24  ;;  %v393_v42 = vadd.f32 %v392_v35, %v292_v26  ;;  %v401_v43 = vmax.f32 %v379_v32, 0.0  ;;  %v405_v57 = vmax.f32 %v391_v37, 0.0 }
 0x186   :  { %v384_v38 = vpop.f32.mrf.mxu0  ;;  %v396_v40 = vpop.f32.mrf.mxu1  ;;  %v468_v24 = vrot.slane %v463_v4, %v673_v33 }
 0x187   :  { %v385_v44 = vadd.f32 %v384_v38, %v287_v23  ;;  %v397_v45 = vadd.f32 %v396_v40, %v297_v25  ;;  %v402_v55 = vmax.f32 %v381_v19, 0.0  ;;  %v406_v28 = vmax.f32 %v393_v42, 0.0 }
 0x188   :  { %v386_v46 = vpop.f32.mrf.mxu0  ;;  %v398_v49 = vpop.f32.mrf.mxu1  ;;  %v433_v60 = vmul.f32 %v416_v41, %v401_v43  ;;  %v437_v6 = vmul.f32 %v426_v1, %v405_v57 }
 0x189   :  { %v387_v56 = vadd.f32 %v386_v46, %v287_v23  ;;  %v399_v36 = vadd.f32 %v398_v49, %v297_v25  ;;  %v403_v58 = vmax.f32 %v385_v44, 0.0  ;;  %v407_v0 = vmax.f32 %v397_v45, 0.0 }
 0x18a   :  { %v434_v2 = vmul.f32 %v416_v41, %v402_v55  ;;  %v438_v51 = vmul.f32 %v426_v1, %v406_v28 }
 0x18b   :  { %v404_v59 = vmax.f32 %v387_v56, 0.0  ;;  %v435_v61 = vmul.f32 %v421_v50, %v403_v58  ;;  %v408_v3 = vmax.f32 %v399_v36, 0.0  ;;  %v439_v8 = vmul.f32 %v431_v47, %v407_v0 }
 0x18d   :  { %v436_v48 = vmul.f32 %v421_v50, %v404_v59  ;;  %v441_v7 = vadd.f32 %v435_v61, %v433_v60  ;;  %v440_v52 = vmul.f32 %v431_v47, %v408_v3 }
 0x18f   :  { %v450_v54 = vadd.f32 %v436_v48, %v434_v2  ;;  %v442_v9 = vadd.f32 %v441_v7, %v437_v6 }
 0x191   :  { %v451_v10 = vadd.f32 %v450_v54, %v438_v51  ;;  %v443_v11 = vadd.f32 %v442_v9, %v439_v8 }
 0x193   :  { %v452_v12 = vadd.f32 %v451_v10, %v440_v52  ;;  %v444_v13 = vrot.slane %v443_v11, 4 }
 0x195   :  { %v453_v14 = vrot.slane %v452_v12, 4  ;;  %v445_v39 = vadd.f32 %v444_v13, %v443_v11 }
 0x197   :  { %v454_v53 = vadd.f32 %v453_v14, %v452_v12  ;;  %v446_v62 = vrot.slane %v445_v39, 2 }
 0x199   :  { %v455_v63 = vrot.slane %v454_v53, 2  ;;  %v447_v17 = vadd.f32 %v446_v62, %v445_v39 }
 0x19b   :  { %v456_v18 = vadd.f32 %v455_v63, %v454_v53  ;;  %v448_v5 = vrot.slane %v447_v17, 1 }
 0x19d   :  { %v457_v20 = vrot.slane %v456_v18, 1  ;;  %v449_v22 = vadd.f32 %v448_v5, %v447_v17 }
 0x19f   :  { %v458_v23 = vadd.f32 %v457_v20, %v456_v18  ;;  %v469_v26 = vadd.f32 %v468_v24, %v449_v22 }
 0x1a1   :  { %v470_v29 = vadd.f32 %v468_v24, %v458_v23 }
 0x1a3   :  { %v473_v25 = vcombine.low %v469_v26, %v470_v29 }
 0x1a5   :  { %v480_v32 = vrot.slane %v473_v25, %v479_v31 }
 0x1a7   :  { %v487_v34 = vrot.slane %v480_v32, %v479_v31 }
 0x1a9   :  { %493 = vst.msk [vmem:[#allocation3] sm:$0x3] %vm491_vm1, %v487_v34 }
 0x1aa   :  { %555 = shalt.err (!%p552_p4)
}
 0x1ab   :  { %503 = dma.vmem_to_hbm [thread:$0]  %s501_s15, 32, %s750_s7, [#allocation4]  }
 0x1ac   :  { %564 = dma.done.wait [#allocation4], 32  }
 0x1ad   :  { %565 = vsyncadd [#allocation4], 4294967264 }
 0x1ae   :  { %507 = vsyncpa [#allocation4], 1 }

</bundles_post_ra>
